<compile_context>
chip_gen: v6e
topology: v6e:2x2x1
jax: 0.10.0
libtpu: 0.0.40
codegen_flags: <defaults>
</compile_context>

<pallas_src>
import functools

import jax
import jax.numpy as jnp
from jax.experimental import pallas as pl
from jax.experimental.pallas import tpu as pltpu


LANE = 128          # lane tile (last dim)
FEAT_PAD = 16       # 10 input features padded to a sublane multiple
HID = 32            # hidden width of fc1/fc2


def _cdiv(a, b):
    return -(-a // b)


def _round_up(n, m):
    return _cdiv(n, m) * m


def mlp_kernel(x_ref, w1_ref, w2_ref, w3_ref, b_ref, o_ref):
    # x_ref : (FEAT_PAD, TB) f32  — batch on lanes
    # w1_ref: (32, 16), w2_ref: (32, 32), w3_ref: (8, 32) — resident, transposed
    # b_ref : (32, 8) f32 — col 0 = b1, col 1 = b2, [0, 2] = b3
    xT = x_ref[...]                                   # (16, TB)

    b1 = b_ref[:, 0:1]                                # (32, 1) -> broadcast over lanes
    b2 = b_ref[:, 1:2]                                # (32, 1)
    b3 = b_ref[0:1, 2:3]                              # (1, 1)

    # fc1 + relu:  (32,16) @ (16,TB) -> (32,TB)
    h1 = jnp.dot(w1_ref[...], xT, preferred_element_type=jnp.float32) + b1
    h1 = jnp.maximum(h1, 0.0)

    # fc2 + relu:  (32,32) @ (32,TB) -> (32,TB)
    h2 = jnp.dot(w2_ref[...], h1, preferred_element_type=jnp.float32) + b2
    h2 = jnp.maximum(h2, 0.0)

    # fc3: (8,32) @ (32,TB) -> (8,TB); only row 0 is real.  Compact, lane-dense store.
    h3 = jnp.dot(w3_ref[...], h2, preferred_element_type=jnp.float32)
    o_ref[...] = (h3[0:1, :] + b3).astype(o_ref.dtype)   # (1, TB)


def pack_params(w1, b1, w2, b2, w3, b3):
    """Transpose to (out, in), zero-pad to tile-friendly shapes, pack biases."""
    # w1: (10, 32) -> w1^T padded to (32, 16)
    w1t = jnp.zeros((HID, FEAT_PAD), jnp.float32).at[:, :10].set(
        w1.astype(jnp.float32).T)
    # w2: (32, 32) -> (32, 32)
    w2t = w2.astype(jnp.float32).T
    # w3: (32, 1) -> w3^T padded to (8, 32), row 0 real
    w3t = jnp.zeros((8, HID), jnp.float32).at[0:1, :].set(
        w3.astype(jnp.float32).T)
    # biases: (32, 8): col0 = b1, col1 = b2, [0,2] = b3
    b_packed = (jnp.zeros((HID, 8), jnp.float32)
                .at[:, 0].set(b1.astype(jnp.float32))
                .at[:, 1].set(b2.astype(jnp.float32))
                .at[0, 2].set(b3.astype(jnp.float32)[0]))
    return w1t, w2t, w3t, b_packed


@functools.partial(jax.jit, static_argnames=("tile_batch",))
def mlp_forward(x, w1, b1, w2, b2, w3, b3, *, tile_batch=1024):
    squeeze = x.ndim == 1
    if squeeze:
        x = x[None, :]                                 # module spec: x is (10,)
    batch = x.shape[0]

    w1t, w2t, w3t, b_packed = pack_params(w1, b1, w2, b2, w3, b3)

    # Balanced batch tiles (lane multiples).  Ensure >=2 grid steps whenever
    # batch spans more than one lane tile so the "parallel" axis can shard
    # across both TensorCores on v7x.
    n_tiles = _cdiv(batch, tile_batch)
    if batch > LANE:
        n_tiles = max(n_tiles, 2)
    tb = _round_up(_cdiv(batch, n_tiles), LANE)
    b_pad = tb * n_tiles

    # Transposed, padded input: batch on lanes, features on sublanes.
    x_t = jnp.zeros((FEAT_PAD, b_pad), jnp.float32).at[:10, :batch].set(
        x.astype(jnp.float32).T)

    out = pl.pallas_call(
        mlp_kernel,
        out_shape=jax.ShapeDtypeStruct((1, b_pad), jnp.float32),
        grid=(n_tiles,),
        in_specs=[
            pl.BlockSpec((FEAT_PAD, tb), lambda i: (0, i)),   # x^T tile (lane-dense)
            pl.BlockSpec((HID, FEAT_PAD), lambda i: (0, 0)),  # w1^T (resident)
            pl.BlockSpec((HID, HID), lambda i: (0, 0)),       # w2^T (resident)
            pl.BlockSpec((8, HID), lambda i: (0, 0)),         # w3^T (resident)
            pl.BlockSpec((HID, 8), lambda i: (0, 0)),         # biases (resident)
        ],
        out_specs=pl.BlockSpec((1, tb), lambda i: (0, i)),    # compact (1, TB) output
        compiler_params=pltpu.CompilerParams(
            dimension_semantics=("parallel",),
            # Let XLA fuse the pad/transpose of x into the input DMA
            # instead of materializing a separate padded copy in HBM.
            allow_input_fusion=[True, False, False, False, False],
        ),
    )(x_t, w1t, w2t, w3t, b_packed)

    y = out[0, :batch][:, None]                        # (batch, 1) — tiny read
    return y[0] if squeeze else y


def init_params(key):
    """Deterministic init mimicking torch.nn.Linear (uniform +/- 1/sqrt(fan_in))."""
    def linear(key, fan_in, fan_out):
        kw, kb = jax.random.split(key)
        bound = 1.0 / (fan_in ** 0.5)
        w = jax.random.uniform(kw, (fan_in, fan_out), jnp.float32, -bound, bound)
        b = jax.random.uniform(kb, (fan_out,), jnp.float32, -bound, bound)
        return w, b

    k1, k2, k3 = jax.random.split(key, 3)
    w1, b1 = linear(k1, 10, 32)
    w2, b2 = linear(k2, 32, 32)
    w3, b3 = linear(k3, 32, 1)
    return w1, b1, w2, b2, w3, b3


def reference_forward(x, w1, b1, w2, b2, w3, b3):
    """Pure-JAX f32 reference mirroring the original torch module."""
    h1 = jnp.maximum(x @ w1 + b1, 0.0)
    h2 = jnp.maximum(h1 @ w2 + b2, 0.0)
    return h2 @ w3 + b3


if __name__ == "__main__":
    key = jax.random.PRNGKey(0)
    kx, kb, kp = jax.random.split(key, 3)

    w1, b1, w2, b2, w3, b3 = init_params(kp)

    # Single-sample case matching the module spec: x = torch.randn(10) -> out (1,)
    x_vec = jax.random.normal(kx, (10,), jnp.float32)
    y_vec = jax.block_until_ready(mlp_forward(x_vec, w1, b1, w2, b2, w3, b3))
    assert y_vec.shape == (1,)

    # Small batched case.
    batch = 8
    x_bat = jax.random.normal(kb, (batch, 10), jnp.float32)
    y_bat = jax.block_until_ready(mlp_forward(x_bat, w1, b1, w2, b2, w3, b3))
    assert y_bat.shape == (batch, 1)

    # Check against the f32 reference of the original module.
    ref_bat = reference_forward(x_bat, w1, b1, w2, b2, w3, b3)
    ref_vec = reference_forward(x_vec[None, :], w1, b1, w2, b2, w3, b3)[0]
    assert jnp.allclose(y_bat, ref_bat, atol=2e-2, rtol=2e-2), (y_bat, ref_bat)
    assert jnp.allclose(y_vec, ref_vec, atol=2e-2, rtol=2e-2), (y_vec, ref_vec)

    print("KERNEL_OK")
</pallas_src>

<mosaic_0001>
module attributes {stable_mosaic.version = 11 : i64} {
  func.func @mlp_kernel(%arg0: i32, %arg1: memref<16x128xf32, #tpu.memory_space<vmem>>, %arg2: memref<32x16xf32, #tpu.memory_space<vmem>>, %arg3: memref<32x32xf32, #tpu.memory_space<vmem>>, %arg4: memref<8x32xf32, #tpu.memory_space<vmem>>, %arg5: memref<32x8xf32, #tpu.memory_space<vmem>>, %arg6: memref<1x128xf32, #tpu.memory_space<vmem>>) attributes {dimension_semantics = [#tpu.dimension_semantics<parallel>], iteration_bounds = array<i64: 1>, scalar_prefetch = 0 : i64, scratch_operands = 0 : i64, tpu.core_type = #tpu.core_type<tc>, window_params = [{transform_indices = @transform_0, window_bounds = array<i64: 16, 128>}, {pipeline_mode = #tpu.pipeline_mode<synchronous>, transform_indices = @transform_1, window_bounds = array<i64: 32, 16>}, {pipeline_mode = #tpu.pipeline_mode<synchronous>, transform_indices = @transform_2, window_bounds = array<i64: 32, 32>}, {pipeline_mode = #tpu.pipeline_mode<synchronous>, transform_indices = @transform_3, window_bounds = array<i64: 8, 32>}, {pipeline_mode = #tpu.pipeline_mode<synchronous>, transform_indices = @transform_4, window_bounds = array<i64: 32, 8>}, {transform_indices = @transform_5, window_bounds = array<i64: 1, 128>}]} {
    %c0 = arith.constant 0 : index
    %c0_0 = arith.constant 0 : index
    %0 = vector.load %arg1[%c0, %c0_0] : memref<16x128xf32, #tpu.memory_space<vmem>>, vector<16x128xf32>
    %c0_1 = arith.constant 0 : index
    %c0_2 = arith.constant 0 : index
    %1 = vector.load %arg5[%c0_1, %c0_2] : memref<32x8xf32, #tpu.memory_space<vmem>>, vector<32x1xf32>
    %c0_3 = arith.constant 0 : index
    %c1 = arith.constant 1 : index
    %2 = vector.load %arg5[%c0_3, %c1] : memref<32x8xf32, #tpu.memory_space<vmem>>, vector<32x1xf32>
    %c0_4 = arith.constant 0 : index
    %c2 = arith.constant 2 : index
    %3 = vector.load %arg5[%c0_4, %c2] : memref<32x8xf32, #tpu.memory_space<vmem>>, vector<1x1xf32>
    %c0_5 = arith.constant 0 : index
    %c0_6 = arith.constant 0 : index
    %4 = vector.load %arg2[%c0_5, %c0_6] : memref<32x16xf32, #tpu.memory_space<vmem>>, vector<32x16xf32>
    %cst = arith.constant dense<0.000000e+00> : vector<32x128xf32>
    %5 = tpu.matmul %4, %0, %cst {dimension_numbers = #tpu.dot_dimension_numbers<[1], [0], [0], [1], [0, 0, 1, 1], [], []>} : vector<32x16xf32>, vector<16x128xf32>, vector<32x128xf32> -> vector<32x128xf32>
    %6 = vector.broadcast %1 : vector<32x1xf32> to vector<32x128xf32>
    %7 = arith.addf %5, %6 : vector<32x128xf32>
    %cst_7 = arith.constant 0.000000e+00 : f32
    %8 = vector.broadcast %cst_7 : f32 to vector<32x128xf32>
    %9 = arith.maximumf %7, %8 : vector<32x128xf32>
    %c0_8 = arith.constant 0 : index
    %c0_9 = arith.constant 0 : index
    %10 = vector.load %arg3[%c0_8, %c0_9] : memref<32x32xf32, #tpu.memory_space<vmem>>, vector<32x32xf32>
    %cst_10 = arith.constant dense<0.000000e+00> : vector<32x128xf32>
    %11 = tpu.matmul %10, %9, %cst_10 {dimension_numbers = #tpu.dot_dimension_numbers<[1], [0], [0], [1], [0, 0, 1, 1], [], []>} : vector<32x32xf32>, vector<32x128xf32>, vector<32x128xf32> -> vector<32x128xf32>
    %12 = vector.broadcast %2 : vector<32x1xf32> to vector<32x128xf32>
    %13 = arith.addf %11, %12 : vector<32x128xf32>
    %cst_11 = arith.constant 0.000000e+00 : f32
    %14 = vector.broadcast %cst_11 : f32 to vector<32x128xf32>
    %15 = arith.maximumf %13, %14 : vector<32x128xf32>
    %c0_12 = arith.constant 0 : index
    %c0_13 = arith.constant 0 : index
    %16 = vector.load %arg4[%c0_12, %c0_13] : memref<8x32xf32, #tpu.memory_space<vmem>>, vector<8x32xf32>
    %cst_14 = arith.constant dense<0.000000e+00> : vector<8x128xf32>
    %17 = tpu.matmul %16, %15, %cst_14 {dimension_numbers = #tpu.dot_dimension_numbers<[1], [0], [0], [1], [0, 0, 1, 1], [], []>} : vector<8x32xf32>, vector<32x128xf32>, vector<8x128xf32> -> vector<8x128xf32>
    %18 = vector.extract_strided_slice %17 {offsets = [0, 0], sizes = [1, 128], strides = [1, 1]} : vector<8x128xf32> to vector<1x128xf32>
    %19 = vector.broadcast %3 : vector<1x1xf32> to vector<1x128xf32>
    %20 = arith.addf %18, %19 : vector<1x128xf32>
    %c0_15 = arith.constant 0 : index
    %c0_16 = arith.constant 0 : index
    %21 = vector.load %arg6[%c0_15, %c0_16] : memref<1x128xf32, #tpu.memory_space<vmem>>, vector<1x128xf32>
    tpu.vector_store %arg6[%c0_15, %c0_16], %20 {strides = array<i32>} : memref<1x128xf32, #tpu.memory_space<vmem>>, vector<1x128xf32>,
    return
  }
  func.func @transform_0(%arg0: i32) -> (i32, i32) {
    %c0_i32 = arith.constant 0 : i32
    %c0_i32_0 = arith.constant 0 : i32
    return %c0_i32, %arg0 : i32, i32
  }
  func.func @transform_1(%arg0: i32) -> (i32, i32) {
    %c0_i32 = arith.constant 0 : i32
    %c0_i32_0 = arith.constant 0 : i32
    %c0_i32_1 = arith.constant 0 : i32
    return %c0_i32, %c0_i32_0 : i32, i32
  }
  func.func @transform_2(%arg0: i32) -> (i32, i32) {
    %c0_i32 = arith.constant 0 : i32
    %c0_i32_0 = arith.constant 0 : i32
    %c0_i32_1 = arith.constant 0 : i32
    return %c0_i32, %c0_i32_0 : i32, i32
  }
  func.func @transform_3(%arg0: i32) -> (i32, i32) {
    %c0_i32 = arith.constant 0 : i32
    %c0_i32_0 = arith.constant 0 : i32
    %c0_i32_1 = arith.constant 0 : i32
    return %c0_i32, %c0_i32_0 : i32, i32
  }
  func.func @transform_4(%arg0: i32) -> (i32, i32) {
    %c0_i32 = arith.constant 0 : i32
    %c0_i32_0 = arith.constant 0 : i32
    %c0_i32_1 = arith.constant 0 : i32
    return %c0_i32, %c0_i32_0 : i32, i32
  }
  func.func @transform_5(%arg0: i32) -> (i32, i32) {
    %c0_i32 = arith.constant 0 : i32
    %c0_i32_0 = arith.constant 0 : i32
    return %c0_i32, %arg0 : i32, i32
  }
}

</mosaic_0001>

<bundles_post_ra>
// kernel: mlp_forward.2
= control target key start
LH: loop header
LB: loop body
LE: loop exit
PB: predicated region body
PF: predicated region fallthrough
CT: control target
= control target key end

     0   :  { %s605_s0 = inlined_call_operand.vmem [shape: f32[32,16], index: 0, kind: input, shape index: {}]   ;;  %s606_s1 = inlined_call_operand.vmem [shape: f32[32,32], index: 1, kind: input, shape index: {}]   ;;  %s607_s2 = inlined_call_operand.vmem [shape: f32[8,32], index: 2, kind: input, shape index: {}]   ;;  %s608_s3 = inlined_call_operand.vmem [shape: f32[32,8], index: 3, kind: input, shape index: {}]   ;;  %s609_s4 = inlined_call_operand.vmem [shape: f32[10,1], index: 4, kind: input, shape index: {}]   ;;  %s610_s5 = inlined_call_operand.<no memory space> [shape: f32[], index: 5, kind: input, shape index: {}]   ;;  %s611_s6 = inlined_call_operand.hbm [shape: f32[1,128], index: 6, kind: output, shape index: {}]  }
   0x1   :  { %v11_v0 = vstv %s610_s5 }
   0x2   :  { %v29_v1 = vlaneseq  ;;  %v60_v2 = vld [vmem:[%s605_s0] sm:$0xff]  ;;  %vm84_vm0 = vcmask 130048   ;;  %v501_v3 = vmov 0   ;;  %v58_v6 = vld [vmem:[%s608_s3 + $0x18] sm:$0xff]  ;;  %v56_v7 = vld [vmem:[%s608_s3 + $0x8] sm:$0xff] }
   0x3   :  { %436 = vmatprep.mubr.msk.f32.mxu0 %vm84_vm0, %v60_v2  ;;  %474 = vset.pattern.permute.xlu1 %v501_v3 }
   0x4   :  { %v30_v4 = vand.u32 127, %v29_v1  ;;  %v40_v5 = vshrl.u32 %v29_v1, 7  ;;  %473 = vset.pattern.permute.xlu0 %v501_v3  ;;  %71 = vperm.xlu1 %474, %v56_v7  }
   0x5   :  { %81 = vperm.xlu0 %473, %v58_v6  }
   0x6   :  { %12 = vsyncpa [#allocation8], 0  ;;  %v403_v8 = vld [vmem:[%s609_s4 + $0x8] sm:$0xff]  ;;  %v41_v9 = vadd.s32 8, %v40_v5  ;;  %v57_v10 = vld [vmem:[%s608_s3 + $0x10] sm:$0xff]  ;;  %vm32_vm1 = vcmp.lt.s32.totalorder %v30_v4, 1 }
   0x7   :  { %v55_v11 = vld [vmem:[%s608_s3] sm:$0xff]  ;;  %v61_v16 = vld [vmem:[%s605_s0 + $0x8] sm:$0xff]  ;;  %v62_v17 = vld [vmem:[%s605_s0 + $0x10] sm:$0xff]  ;;  %vm206_vm3 = vcmask 261120   ;;  %v502_v20 = vmov 1   ;;  %v503_v40 = vmov 0.0  }
   0x8   :  { %v23_v12 = vld [vmem:[%s609_s4] sm:$0xff]  ;;  %vm42_vm2 = vcmp.lt.s32.totalorder %v41_v9, 10  ;;  %66 = vperm.xlu1 %474, %v55_v11   ;;  %v63_v18 = vld [vmem:[%s605_s0 + $0x18] sm:$0xff]  ;;  %v187_v37 = vld [vmem:[%s606_s1 + $0x8] sm:$0xff]  ;;  %vm504_vm4 = vmmov 0   ;;  %v505_v42 = vmov 2  }
   0x9   :  { %v43_v13 = vsel %vm42_vm2, %v403_v8, %v11_v0  ;;  %76 = vperm.xlu0 %473, %v57_v10   ;;  %v33_v15 = vsel %vm32_vm1, %v23_v12, %v11_v0  ;;  %v186_v19 = vld [vmem:[%s606_s1] sm:$0xff]  ;;  %v188_v38 = vld [vmem:[%s606_s1 + $0x10] sm:$0xff]  ;;  %v189_v39 = vld [vmem:[%s606_s1 + $0x18] sm:$0xff]  ;;  %s506_s26 = smov [#allocation7]  }
   0xa   :  { %v48_v14 = vsel %vm32_vm1, %v43_v13, %v11_v0  ;;  %450 = vmatprep.mubr.msk.f32.mxu1 %vm206_vm3, %v186_v19  ;;  %v59_v41 = vld [vmem:[%s608_s3] sm:$0x1]  ;;  %s395_s27 = sshll.u32 %s506_s26, 4  ;;  %s396_s27 = int_to_ptr.vmem [resolvable:$true] %s395_s27 }
   0xb   :  { %432 = vmatprep.subr.mxu0 %v48_v14  ;;  %v308_v59 = vld [vmem:[%s607_s2] sm:$0xff]  ;;  %s479_s28 = scalar_lea.vmem %s396_s27, 16  ;;  %s483_s5 = scalar_lea.vmem %s396_s27, 32 }
   0xc   :  { %433 = vmatpush3.msra.mxu0 %v48_v14  ;;  %476 = vset.pattern.permute.xlu1 %v502_v20  ;;  %p480_p0 = scmp.ne.s32.totalorder %s396_s27, %s479_s28  ;;  %p484_p1 = scmp.lt.s32.totalorder %s396_s27, %s396_s27 }
   0xd   :  { %434 = vmatprep.subr.mxu0 %v33_v15  ;;  %475 = vset.pattern.permute.xlu0 %v502_v20  ;;  %p485_p2 = scmp.lt.s32.totalorder %s483_s5, %s479_s28 }
   0xe   :  { %435 = vmatpush3.msra.mxu0 %v33_v15  ;;  %199 = vperm.xlu1 %476, %v57_v10  }
   0xf   :  { %437 = vmatmul.mubr.msk.f32.vlgmr.msra.gmra.mxu0 %vm84_vm0, %v61_v16  ;;  %203 = vperm.xlu0 %475, %v58_v6   ;;  %p486_p3 = por %p485_p2, %p484_p1 }
  0x10   :  { %439 = vmatprep.mubr.msk.f32.mxu0 %vm84_vm0, %v62_v17  ;;  %456 = vmatprep.subr.mxu0 %v503_v40 }
  0x11   :  { %p487_p4 = pnand %p486_p3, %p480_p0 }
  0x12   :  { %195 = vperm.xlu1 %476, %v56_v7  }
  0x13   :  { %440 = vmatmul.mubr.msk.f32.gmra.mxu0 %vm84_vm0, %v63_v18  ;;  %191 = vperm.xlu0 %475, %v55_v11  }
  0x14   :  { %464 = vmatprep.mubr.msk.f32.mxu0 %vm504_vm4, %v503_v40 }
  0x16   :  { %477 = vset.pattern.permute.xlu1 %v505_v42 }
  0x17   :  { %478 = vset.pattern.permute.xlu0 %v505_v42  ;;  %384 = vperm.xlu1 %477, %v59_v41  }
  0x7f   :  { %v72_v22 = vpop.permute.xlu1 %71 }
  0x80   :  { %v82_v21 = vpop.permute.xlu0 %81 }
  0x83   :  { %v67_v28 = vpop.permute.xlu1 %66 }
  0x84   :  { %v77_v26 = vpop.permute.xlu0 %76 }
  0x89   :  { %v200_v43 = vpop.permute.xlu1 %199 }
  0x8a   :  { %v204_v44 = vpop.permute.xlu0 %203 }
  0x8d   :  { %v196_v47 = vpop.permute.xlu1 %195 }
  0x8e   :  { %v192_v50 = vpop.permute.xlu0 %191 }
  0x92   :  { %v385_v60 = vpop.permute.xlu1 %384 }
  0xcf   :  { %v438_v23 = vpop.f32.mrf.mxu0 }
  0xd0   :  { %v169_v30 = vadd.f32 %v438_v23, %v72_v22 }
  0xd1   :  { %v163_v24 = vpop.f32.mrf.mxu0 }
  0xd2   :  { %v164_v33 = vadd.f32 %v163_v24, %v67_v28  ;;  %v183_v35 = vmax.f32 %v169_v30, 0.0 }
  0xd3   :  { %v441_v25 = vpop.f32.mrf.mxu0 }
  0xd4   :  { %v179_v27 = vadd.f32 %v441_v25, %v82_v21  ;;  %v182_v36 = vmax.f32 %v164_v33, 0.0 }
  0xd5   :  { %v173_v29 = vpop.f32.mrf.mxu0 }
  0xd6   :  { %v185_v31 = vmax.f32 %v179_v27, 0.0  ;;  %v174_v32 = vadd.f32 %v173_v29, %v77_v26 }
  0xd8   :  { %v184_v34 = vmax.f32 %v174_v32, 0.0  ;;  %442 = vmatprep.subr.mxu1 %v185_v31 }
  0xd9   :  { %443 = vmatpush3.msra.mxu1 %v185_v31 }
  0xda   :  { %444 = vmatprep.subr.mxu1 %v184_v34 }
  0xdb   :  { %445 = vmatpush3.msra.mxu1 %v184_v34 }
  0xdc   :  { %446 = vmatprep.subr.mxu1 %v183_v35 }
  0xdd   :  { %447 = vmatpush3.msra.mxu1 %v183_v35 }
  0xde   :  { %448 = vmatprep.subr.mxu1 %v182_v36 }
  0xdf   :  { %449 = vmatpush3.msra.mxu1 %v182_v36 }
  0xe0   :  { %451 = vmatmul.mubr.msk.f32.vlgmr.msra.gmra.mxu1 %vm206_vm3, %v187_v37 }
  0xe1   :  { %453 = vmatprep.mubr.msk.f32.mxu1 %vm206_vm3, %v188_v38 }
  0xe4   :  { %454 = vmatmul.mubr.msk.f32.gmra.mxu1 %vm206_vm3, %v189_v39 }
 0x1a0   :  { %v452_v45 = vpop.f32.mrf.mxu1 }
 0x1a1   :  { %v291_v52 = vadd.f32 %v452_v45, %v196_v47 }
 0x1a2   :  { %v285_v46 = vpop.f32.mrf.mxu1 }
 0x1a3   :  { %v286_v55 = vadd.f32 %v285_v46, %v192_v50  ;;  %v305_v57 = vmax.f32 %v291_v52, 0.0 }
 0x1a4   :  { %v455_v48 = vpop.f32.mrf.mxu1 }
 0x1a5   :  { %v301_v49 = vadd.f32 %v455_v48, %v204_v44  ;;  %v304_v58 = vmax.f32 %v286_v55, 0.0 }
 0x1a6   :  { %v295_v51 = vpop.f32.mrf.mxu1 }
 0x1a7   :  { %v307_v53 = vmax.f32 %v301_v49, 0.0  ;;  %v296_v54 = vadd.f32 %v295_v51, %v200_v43 }
 0x1a9   :  { %v306_v56 = vmax.f32 %v296_v54, 0.0  ;;  %457 = vmatpush3.msra.mxu0 %v307_v53 }
 0x1aa   :  { %458 = vmatprep.subr.mxu0 %v503_v40 }
 0x1ab   :  { %459 = vmatpush3.msra.mxu0 %v306_v56 }
 0x1ac   :  { %460 = vmatprep.subr.mxu0 %v503_v40 }
 0x1ad   :  { %461 = vmatpush3.msra.mxu0 %v305_v57 }
 0x1ae   :  { %462 = vmatprep.subr.mxu0 %v503_v40 }
 0x1af   :  { %463 = vmatpush3.msra.mxu0 %v304_v58 }
 0x1b0   :  { %465 = vmatmul.mubr.msk.f32.vlgmr.msra.gmra.mxu0 %vm206_vm3, %v308_v59 }
 0x270   :  { %v378_v61 = vpop.f32.mrf.mxu0 }
 0x271   :  { %v387_v62 = vadd.f32 %v385_v60, %v378_v61 }
 0x272   :  { %v466_v63 = vpop.f32.mrf.mxu0 }
 0x273   :  { %388 = vst [vmem:[#allocation7] sm:$0x1] %v387_v62 }
 0x274   :  { %490 = shalt.err (!%p487_p4)
}
 0x275   :  { %398 = dma.vmem_to_hbm [thread:$0]  %s396_s27, 16, %s611_s6, [#allocation8]  }
 0x276   :  { %499 = dma.done.wait [#allocation8], 16  }
 0x277   :  { %500 = vsyncadd [#allocation8], 4294967280 }
 0x278   :  { %402 = vsyncpa [#allocation8], 1 }

</bundles_post_ra>
